<compile_context>
chip_gen: v5e
topology: v5e:2x2
jax: 0.10.0
libtpu: 0.0.40
codegen_flags: <defaults>
</compile_context>

<pallas_src>
import functools

import jax
import jax.numpy as jnp
from jax.experimental import pallas as pl
from jax.experimental.pallas import tpu as pltpu


def _model_kernel(x_ref, w1_ref, b1_ref, w2_ref, b2_ref, o_ref, acc_ref):
    """Grid axis 0 = reduction over d_in tiles."""
    k = pl.program_id(0)

    @pl.when(k == 0)
    def _():
        acc_ref[...] = jnp.zeros_like(acc_ref)

    # backbone hot loop: accumulate x_tile @ W1_tile on the MXU in f32.
    acc_ref[...] += jnp.dot(x_ref[...], w1_ref[...],
                            preferred_element_type=jnp.float32)

    @pl.when(k == pl.num_programs(0) - 1)
    def _():
        # bias + ReLU in f32, then classifier matmul (bf16 inputs, f32 acc).
        feats = jnp.maximum(acc_ref[...] + b1_ref[...], 0.0)
        logits = jnp.dot(feats.astype(w2_ref.dtype), w2_ref[...],
                         preferred_element_type=jnp.float32) + b2_ref[...]
        o_ref[...] = logits.astype(o_ref.dtype)


@functools.partial(jax.jit, static_argnames=("tk",))
def model_forward(x_nchw, w1, b1, w2, b2, *, tk=256):
    """x_nchw: (B, C, H, W) float32.  Returns logits (B, num_class) float32."""
    B = x_nchw.shape[0]
    x_flat = x_nchw.reshape(B, -1)                      # (B, d_in)
    d_in = x_flat.shape[1]
    feat_dim = w1.shape[1]
    num_class = w2.shape[1]

    # Lane-dense output: pad classifier dim up to a multiple of 128.
    nc_pad = max(128, ((num_class + 127) // 128) * 128)

    # Pad the reduction dim to a multiple of the K tile (zeros are
    # matmul-neutral), so every grid step sees a full (B, TK)/(TK, F) block.
    k_tiles = pl.cdiv(d_in, tk)
    d_pad = k_tiles * tk
    if d_pad != d_in:
        x_flat = jnp.pad(x_flat, ((0, 0), (0, d_pad - d_in)))
        w1 = jnp.pad(w1, ((0, d_pad - d_in), (0, 0)))

    # bf16 on the wire / into the MXU; biases stay f32 (added to f32 acc).
    x_bf = x_flat.astype(jnp.bfloat16)
    w1_bf = w1.astype(jnp.bfloat16)
    w2_bf = jnp.pad(w2, ((0, 0), (0, nc_pad - num_class))).astype(jnp.bfloat16)
    b1_2d = b1.reshape(1, feat_dim).astype(jnp.float32)
    b2_2d = jnp.pad(b2, (0, nc_pad - num_class)).reshape(1, nc_pad).astype(
        jnp.float32)

    out = pl.pallas_call(
        _model_kernel,
        out_shape=jax.ShapeDtypeStruct((B, nc_pad), jnp.float32),
        grid=(k_tiles,),
        in_specs=[
            pl.BlockSpec((B, tk), lambda k: (0, k)),          # x K-tiles
            pl.BlockSpec((tk, feat_dim), lambda k: (k, 0)),   # W1 K-tiles
            pl.BlockSpec((1, feat_dim), lambda k: (0, 0)),    # b1 resident
            pl.BlockSpec((feat_dim, nc_pad), lambda k: (0, 0)),  # W2 resident
            pl.BlockSpec((1, nc_pad), lambda k: (0, 0)),      # b2 resident
        ],
        out_specs=pl.BlockSpec((B, nc_pad), lambda k: (0, 0)),
        scratch_shapes=[pltpu.VMEM((B, feat_dim), jnp.float32)],
        compiler_params=pltpu.CompilerParams(
            dimension_semantics=("arbitrary",),     # reduction axis
            vmem_limit_bytes=32 * 1024 * 1024,      # safe on v5e/v6e/v7x
        ),
    )(x_bf, w1_bf, b1_2d, w2_bf, b2_2d)

    return out[:, :num_class]


def _linear_init(key, fan_in, fan_out):
    """PyTorch nn.Linear default init: U(-1/sqrt(fan_in), 1/sqrt(fan_in))."""
    kw, kb = jax.random.split(key)
    bound = 1.0 / (fan_in ** 0.5)
    w = jax.random.uniform(kw, (fan_in, fan_out), jnp.float32, -bound, bound)
    b = jax.random.uniform(kb, (fan_out,), jnp.float32, -bound, bound)
    return w, b


if __name__ == "__main__":
    # Small shapes consistent with the module's forward pass.
    B, C, H, W = 8, 4, 16, 16
    d_in = C * H * W          # 1024
    feat_dim = 128
    num_class = 16

    key = jax.random.PRNGKey(0)
    kx, k_backbone, k_classifier = jax.random.split(key, 3)

    x = jax.random.normal(kx, (B, C, H, W), jnp.float32)

    # Deterministic synthetic backbone (flatten -> Linear -> ReLU).
    # TODO(synk): the real backbone is injected at construction time; only its
    # 'features' output contract (B, feat_dim) is reproduced here.
    w1, b1 = _linear_init(k_backbone, d_in, feat_dim)
    # classifier = nn.Linear(feat_dim, num_class)
    w2, b2 = _linear_init(k_classifier, feat_dim, num_class)

    logits = model_forward(x, w1, b1, w2, b2)
    jax.block_until_ready(logits)
    assert logits.shape == (B, num_class)

    # Reference 1: emulate the kernel's bf16 precision in pure JAX (tight tol).
    x_flat = x.reshape(B, -1)
    x_b = x_flat.astype(jnp.bfloat16).astype(jnp.float32)
    w1_b = w1.astype(jnp.bfloat16).astype(jnp.float32)
    w2_b = w2.astype(jnp.bfloat16).astype(jnp.float32)
    feats_b = jnp.maximum(x_b @ w1_b + b1, 0.0)
    feats_bb = feats_b.astype(jnp.bfloat16).astype(jnp.float32)
    logits_bf16_ref = feats_bb @ w2_b + b2
    assert jnp.allclose(logits, logits_bf16_ref, atol=2e-3, rtol=2e-3)

    # Reference 2: full-f32 semantics of the original module (loose tol for bf16).
    feats_ref = jnp.maximum(x_flat @ w1 + b1, 0.0)
    logits_ref = feats_ref @ w2 + b2
    assert jnp.allclose(logits, logits_ref, atol=5e-2, rtol=5e-2)

    print("KERNEL_OK")
</pallas_src>

<mosaic_0001>
module attributes {stable_mosaic.version = 11 : i64} {
  func.func @_model_kernel(%arg0: i32, %arg1: memref<8x256xbf16, #tpu.memory_space<vmem>>, %arg2: memref<256x128xbf16, #tpu.memory_space<vmem>>, %arg3: memref<1x128xf32, #tpu.memory_space<vmem>>, %arg4: memref<128x128xbf16, #tpu.memory_space<vmem>>, %arg5: memref<1x128xf32, #tpu.memory_space<vmem>>, %arg6: memref<8x128xf32, #tpu.memory_space<vmem>>, %arg7: memref<8x128xf32, #tpu.memory_space<vmem>>) attributes {dimension_semantics = [#tpu.dimension_semantics<arbitrary>], iteration_bounds = array<i64: 4>, scalar_prefetch = 0 : i64, scratch_operands = 1 : i64, tpu.core_type = #tpu.core_type<tc>, window_params = [{transform_indices = @transform_0, window_bounds = array<i64: 8, 256>}, {transform_indices = @transform_1, window_bounds = array<i64: 256, 128>}, {pipeline_mode = #tpu.pipeline_mode<synchronous>, transform_indices = @transform_2, window_bounds = array<i64: 1, 128>}, {pipeline_mode = #tpu.pipeline_mode<synchronous>, transform_indices = @transform_3, window_bounds = array<i64: 128, 128>}, {pipeline_mode = #tpu.pipeline_mode<synchronous>, transform_indices = @transform_4, window_bounds = array<i64: 1, 128>}, {pipeline_mode = #tpu.pipeline_mode<synchronous>, transform_indices = @transform_5, window_bounds = array<i64: 8, 128>}]} {
    %c0_i32 = arith.constant 0 : i32
    %0 = arith.cmpi eq, %arg0, %c0_i32 : i32
    %1 = arith.extui %0 : i1 to i32
    %c0_i32_0 = arith.constant 0 : i32
    %2 = arith.cmpi ne, %1, %c0_i32_0 : i32
    scf.if %2 {
      %cst_9 = arith.constant 0.000000e+00 : f32
      %12 = vector.broadcast %cst_9 : f32 to vector<8x128xf32>
      %c0_10 = arith.constant 0 : index
      %c0_11 = arith.constant 0 : index
      %13 = vector.load %arg7[%c0_10, %c0_11] : memref<8x128xf32, #tpu.memory_space<vmem>>, vector<8x128xf32>
      tpu.vector_store %arg7[%c0_10, %c0_11], %12 {strides = array<i32>} : memref<8x128xf32, #tpu.memory_space<vmem>>, vector<8x128xf32>,
    } else {
    }
    %c0 = arith.constant 0 : index
    %c0_1 = arith.constant 0 : index
    %3 = vector.load %arg7[%c0, %c0_1] : memref<8x128xf32, #tpu.memory_space<vmem>>, vector<8x128xf32>
    %c0_2 = arith.constant 0 : index
    %c0_3 = arith.constant 0 : index
    %4 = vector.load %arg1[%c0_2, %c0_3] : memref<8x256xbf16, #tpu.memory_space<vmem>>, vector<8x256xbf16>
    %c0_4 = arith.constant 0 : index
    %c0_5 = arith.constant 0 : index
    %5 = vector.load %arg2[%c0_4, %c0_5] : memref<256x128xbf16, #tpu.memory_space<vmem>>, vector<256x128xbf16>
    %cst = arith.constant dense<0.000000e+00> : vector<8x128xf32>
    %6 = tpu.matmul %4, %5, %cst {dimension_numbers = #tpu.dot_dimension_numbers<[1], [0], [0], [1], [0, 0, 1, 1], [], []>} : vector<8x256xbf16>, vector<256x128xbf16>, vector<8x128xf32> -> vector<8x128xf32>
    %7 = arith.addf %3, %6 : vector<8x128xf32>
    %c0_6 = arith.constant 0 : index
    %c0_7 = arith.constant 0 : index
    %8 = vector.load %arg7[%c0_6, %c0_7] : memref<8x128xf32, #tpu.memory_space<vmem>>, vector<8x128xf32>
    tpu.vector_store %arg7[%c0_6, %c0_7], %7 {strides = array<i32>} : memref<8x128xf32, #tpu.memory_space<vmem>>, vector<8x128xf32>,
    %c3_i32 = arith.constant 3 : i32
    %9 = arith.cmpi eq, %arg0, %c3_i32 : i32
    %10 = arith.extui %9 : i1 to i32
    %c0_i32_8 = arith.constant 0 : i32
    %11 = arith.cmpi ne, %10, %c0_i32_8 : i32
    scf.if %11 {
      %c0_9 = arith.constant 0 : index
      %c0_10 = arith.constant 0 : index
      %12 = vector.load %arg7[%c0_9, %c0_10] : memref<8x128xf32, #tpu.memory_space<vmem>>, vector<8x128xf32>
      %c0_11 = arith.constant 0 : index
      %c0_12 = arith.constant 0 : index
      %13 = vector.load %arg3[%c0_11, %c0_12] : memref<1x128xf32, #tpu.memory_space<vmem>>, vector<1x128xf32>
      %14 = vector.broadcast %13 : vector<1x128xf32> to vector<8x128xf32>
      %15 = arith.addf %12, %14 : vector<8x128xf32>
      %cst_13 = arith.constant 0.000000e+00 : f32
      %16 = vector.broadcast %cst_13 : f32 to vector<8x128xf32>
      %17 = arith.maximumf %15, %16 : vector<8x128xf32>
      %18 = arith.truncf %17 : vector<8x128xf32> to vector<8x128xbf16>
      %c0_14 = arith.constant 0 : index
      %c0_15 = arith.constant 0 : index
      %19 = vector.load %arg4[%c0_14, %c0_15] : memref<128x128xbf16, #tpu.memory_space<vmem>>, vector<128x128xbf16>
      %cst_16 = arith.constant dense<0.000000e+00> : vector<8x128xf32>
      %20 = tpu.matmul %18, %19, %cst_16 {dimension_numbers = #tpu.dot_dimension_numbers<[1], [0], [0], [1], [0, 0, 1, 1], [], []>} : vector<8x128xbf16>, vector<128x128xbf16>, vector<8x128xf32> -> vector<8x128xf32>
      %c0_17 = arith.constant 0 : index
      %c0_18 = arith.constant 0 : index
      %21 = vector.load %arg5[%c0_17, %c0_18] : memref<1x128xf32, #tpu.memory_space<vmem>>, vector<1x128xf32>
      %22 = vector.broadcast %21 : vector<1x128xf32> to vector<8x128xf32>
      %23 = arith.addf %20, %22 : vector<8x128xf32>
      %c0_19 = arith.constant 0 : index
      %c0_20 = arith.constant 0 : index
      %24 = vector.load %arg6[%c0_19, %c0_20] : memref<8x128xf32, #tpu.memory_space<vmem>>, vector<8x128xf32>
      tpu.vector_store %arg6[%c0_19, %c0_20], %23 {strides = array<i32>} : memref<8x128xf32, #tpu.memory_space<vmem>>, vector<8x128xf32>,
    } else {
    }
    return
  }
  func.func @transform_0(%arg0: i32) -> (i32, i32) {
    %c0_i32 = arith.constant 0 : i32
    %c0_i32_0 = arith.constant 0 : i32
    return %c0_i32, %arg0 : i32, i32
  }
  func.func @transform_1(%arg0: i32) -> (i32, i32) {
    %c0_i32 = arith.constant 0 : i32
    %c0_i32_0 = arith.constant 0 : i32
    return %arg0, %c0_i32 : i32, i32
  }
  func.func @transform_2(%arg0: i32) -> (i32, i32) {
    %c0_i32 = arith.constant 0 : i32
    %c0_i32_0 = arith.constant 0 : i32
    %c0_i32_1 = arith.constant 0 : i32
    return %c0_i32, %c0_i32_0 : i32, i32
  }
  func.func @transform_3(%arg0: i32) -> (i32, i32) {
    %c0_i32 = arith.constant 0 : i32
    %c0_i32_0 = arith.constant 0 : i32
    %c0_i32_1 = arith.constant 0 : i32
    return %c0_i32, %c0_i32_0 : i32, i32
  }
  func.func @transform_4(%arg0: i32) -> (i32, i32) {
    %c0_i32 = arith.constant 0 : i32
    %c0_i32_0 = arith.constant 0 : i32
    %c0_i32_1 = arith.constant 0 : i32
    return %c0_i32, %c0_i32_0 : i32, i32
  }
  func.func @transform_5(%arg0: i32) -> (i32, i32) {
    %c0_i32 = arith.constant 0 : i32
    %c0_i32_0 = arith.constant 0 : i32
    %c0_i32_1 = arith.constant 0 : i32
    return %c0_i32, %c0_i32_0 : i32, i32
  }
}

</mosaic_0001>

<bundles_post_ra>
// kernel: model_forward.1
= control target key start
LH: loop header
LB: loop body
LE: loop exit
PB: predicated region body
PF: predicated region fallthrough
CT: control target
= control target key end

     0   :  { %10 = vsyncpa [#allocation4], 0  ;;  %s783_s18 = smov 0   ;;  %s861_s0 = inlined_call_operand.vmem [shape: bf16[8,1024], index: 0, kind: input, shape index: {}]   ;;  %s862_s1 = inlined_call_operand.vmem [shape: bf16[1024,128], index: 1, kind: input, shape index: {}]   ;;  %s863_s2 = inlined_call_operand.vmem [shape: f32[1,128], index: 2, kind: input, shape index: {}]   ;;  %s864_s3 = inlined_call_operand.vmem [shape: bf16[128,128], index: 3, kind: input, shape index: {}]   ;;  %s865_s4 = inlined_call_operand.vmem [shape: f32[1,128], index: 4, kind: input, shape index: {}]   ;;  %s866_s5 = inlined_call_operand.hbm [shape: f32[8,128], index: 5, kind: output, shape index: {}]  }
   0x1 LB: > { %s789_s19 = sadd.s32 4294967295, %s749_s18   ;;  %p562_p0 = scmp.ge.s32.totalorder %s749_s18, 1  ;;  %s749_s18 = sphi %s783_s18, %s16_s18  }
   0x2   : > { %p195_p1 = scmp.lt.s32.totalorder %s749_s18, 5 }
   0x4   : > { %p196_p2 = pnand %p562_p0, %p195_p1 }
   0x5   : > { %s563_s20 = sshll.u32 (!%p196_p2), %s789_s19, 1  ;;  %s565_s21 = sshll.u32 (!%p196_p2), %s789_s19, 5 }
   0x6   : > { %199 = sbr.rel (%p196_p2) target bundleno = 359 (0x167), region = 40  ;;  %p224_p3 = scmp.lt.s32.totalorder (!%p196_p2), %s563_s20, 7 }
   0x7   : > { %p230_p4 = scmp.lt.s32.totalorder (!%p196_p2), %s565_s21, 127  ;;  %p567_p5 = scmp.ne.s32.totalorder (!%p196_p2), %s789_s19, 0 }
   0xb   : > { %s868_s20 = smov (!%p224_p3, %s563_s20), 7  ;;  %s870_s21 = smov (!%p230_p4, %s565_s21), 127 }
   0xc   : > { %s564_s22 = sshll.u32 %s868_s20, 2  ;;  %s566_s26 = sshll.u32 %s870_s21, 2 }
   0xd   : > { %s798_s25 = scalar_lea.vmem %s861_s0, %s564_s22  ;;  %s803_s29 = scalar_lea.vmem %s862_s1, %s566_s26 }
   0xe   : > { %238 = sbr.rel (%p567_p5) target bundleno = 21 (0x15), region = 44 }
  0x13   : > { %v751_v0 = vmov 0.0  }
  0x14   : > { %239 = vst [vmem:[#allocation2] sm:$0xff] %v751_v0 }
  0x15 PF: > { %v676_v1 = vld [vmem:[%s803_s29 + $0x38] sm:$0xff]  ;;  %v675_v3 = vld [vmem:[%s803_s29 + $0x30] sm:$0xff]  ;;  %v674_v5 = vld [vmem:[%s803_s29 + $0x28] sm:$0xff]  ;;  %p632_p6 = scmp.ne.s32.totalorder %s789_s19, 3 }
  0x16   : > { %v684_v2 = vld [vmem:[%s803_s29 + $0x78] sm:$0xff]  ;;  %377 = vmatpush.bf16.msra.mxu0 %v676_v1  ;;  %v683_v4 = vld [vmem:[%s803_s29 + $0x70] sm:$0xff]  ;;  %v682_v6 = vld [vmem:[%s803_s29 + $0x68] sm:$0xff] }
  0x17   : > { %390 = vmatpush.bf16.msra.mxu1 %v684_v2  ;;  %v673_v7 = vld [vmem:[%s803_s29 + $0x20] sm:$0xff]  ;;  %v672_v9 = vld [vmem:[%s803_s29 + $0x18] sm:$0xff]  ;;  %v671_v11 = vld [vmem:[%s803_s29 + $0x10] sm:$0xff] }
  0x18   : > { %v681_v8 = vld [vmem:[%s803_s29 + $0x60] sm:$0xff]  ;;  %v680_v10 = vld [vmem:[%s803_s29 + $0x58] sm:$0xff]  ;;  %v679_v12 = vld [vmem:[%s803_s29 + $0x50] sm:$0xff] }
  0x19   : > { %v670_v13 = vld [vmem:[%s803_s29 + $0x8] sm:$0xff]  ;;  %v241_v15 = vld [vmem:[%s798_s25] sm:$0xff] }
  0x1a   : > { %378 = vmatpush.bf16.msra.mxu0 %v675_v3  ;;  %v678_v14 = vld [vmem:[%s803_s29 + $0x48] sm:$0xff]  ;;  %v275_v16 = vunpack.c.l.b16 %v241_v15  ;;  %v276_v17 = vunpack.c.h.b16 %v241_v15  ;;  %v669_v18 = vld [vmem:[%s803_s29] sm:$0xff] }
  0x1b   : > { %391 = vmatpush.bf16.msra.mxu1 %v683_v4  ;;  %v677_v19 = vld [vmem:[%s803_s29 + $0x40] sm:$0xff] }
  0x1c   : > { %v277_v20 = vpack.c.b16 %v275_v16, %v275_v16  ;;  %v278_v21 = vpack.c.b16 %v276_v17, %v276_v17  ;;  %v240_v23 = vld [vmem:[#allocation2] sm:$0xff] }
  0x1e   : > { %379 = vmatpush.bf16.msra.mxu0 %v674_v5 }
  0x1f   : > { %392 = vmatpush.bf16.msra.mxu1 %v682_v6 }
  0x22   : > { %380 = vmatpush.bf16.msra.mxu0 %v673_v7 }
  0x23   : > { %393 = vmatpush.bf16.msra.mxu1 %v681_v8 }
  0x26   : > { %381 = vmatpush.bf16.msra.mxu0 %v672_v9 }
  0x27   : > { %394 = vmatpush.bf16.msra.mxu1 %v680_v10 }
  0x2a   : > { %382 = vmatpush.bf16.msra.mxu0 %v671_v11 }
  0x2b   : > { %395 = vmatpush.bf16.msra.mxu1 %v679_v12 }
  0x2e   : > { %383 = vmatpush.bf16.msra.mxu0 %v670_v13 }
  0x2f   : > { %396 = vmatpush.bf16.msra.mxu1 %v678_v14 }
  0x32   : > { %384 = vmatpush.bf16.msra.mxu0 %v669_v18 }
  0x33   : > { %397 = vmatpush.bf16.msra.mxu1 %v677_v19 }
  0x35   : > { %385 = vmatmul.bf16.vlgmr.msra.gmra.mxu0 %v277_v20 }
  0x36   : > { %398 = vmatmul.bf16.vlgmr.msra.gmra.mxu1 %v278_v21 }
  0xb2   : > { %v386_v22 = vpop.f32.mrf.mxu0 }
  0xb3   : > { %v399_v24 = vpop.f32.mrf.mxu1 }
  0xb4   : > { %v400_v25 = vadd.f32 %v399_v24, %v386_v22 }
  0xb6   : > { %v403_v26 = vadd.f32 %v400_v25, %v240_v23 }
  0xb7   : > { %408 = sbr.rel (%p632_p6) target bundleno = 354 (0x162), region = 48 }
  0xb8   : > { %404 = vst [vmem:[#allocation2] sm:$0xff] %v403_v26 }
  0xba   : > { %v388_v27 = vpop.f32.mrf.mxu0 }
  0xbb   : > { %v401_v28 = vpop.f32.mrf.mxu1 }
  0xbc   : > { %v692_v29 = vld [vmem:[%s864_s3 + $0x38] sm:$0xff]  ;;  %v691_v30 = vld [vmem:[%s864_s3 + $0x30] sm:$0xff]  ;;  %v690_v31 = vld [vmem:[%s864_s3 + $0x28] sm:$0xff] }
  0xbd   : > { %485 = vmatpush.bf16.msra.mxu0 %v692_v29  ;;  %v689_v32 = vld [vmem:[%s864_s3 + $0x20] sm:$0xff]  ;;  %v688_v33 = vld [vmem:[%s864_s3 + $0x18] sm:$0xff]  ;;  %v687_v35 = vld [vmem:[%s864_s3 + $0x10] sm:$0xff] }
  0xbe   : > { %v709_v34 = vld [vmem:[%s863_s2] ss:$0 sm:$0xff]  ;;  %v686_v38 = vld [vmem:[%s864_s3 + $0x8] sm:$0xff] }
  0xbf   : > { %v409_v36 = vld [vmem:[#allocation2] sm:$0xff] }
  0xc0   : > { %v414_v37 = vadd.f32 %v709_v34, %v409_v36  ;;  %v685_v40 = vld [vmem:[%s864_s3] sm:$0xff] }
  0xc1   : > { %486 = vmatpush.bf16.msra.mxu0 %v691_v30  ;;  %v710_v42 = vld [vmem:[%s865_s4] ss:$0 sm:$0xff] }
  0xc2   : > { %v415_v39 = vmax.f32 %v414_v37, 0.0 }
  0xc4   : > { %v416_v41 = vpack.c.bf16 %v415_v39, %v415_v39 }
  0xc5   : > { %487 = vmatpush.bf16.msra.mxu0 %v690_v31 }
  0xc9   : > { %488 = vmatpush.bf16.msra.mxu0 %v689_v32 }
  0xcd   : > { %489 = vmatpush.bf16.msra.mxu0 %v688_v33 }
  0xd1   : > { %490 = vmatpush.bf16.msra.mxu0 %v687_v35 }
  0xd5   : > { %491 = vmatpush.bf16.msra.mxu0 %v686_v38 }
  0xd9   : > { %492 = vmatpush.bf16.msra.mxu0 %v685_v40 }
  0xdc   : > { %493 = vmatmul.bf16.vlgmr.msra.gmra.mxu0 %v416_v41 }
 0x159   : > { %v494_v43 = vpop.f32.mrf.mxu0 }
 0x15a   : > { %v495_v44 = vadd.f32 %v710_v42, %v494_v43 }
 0x15c   : > { %498 = vst [vmem:[#allocation3] sm:$0xff] %v495_v44 }
 0x161   : > { %v496_v45 = vpop.f32.mrf.mxu0 }
 0x162 PF: > { %p697_p7 = scmp.eq.s32.totalorder %s789_s19, 3  ;;  %s752_s27 = smov [#allocation3]  }
 0x163   : > { %s505_s28 = sshll.u32 %s752_s27, 4  ;;  %s507_s6 = sshll.u32 %s866_s5, 4  ;;  %s506_s28 = int_to_ptr.vmem [resolvable:$true] %s505_s28  ;;  %s508_s6 = int_to_ptr.hbm [resolvable:$true] %s507_s6 }
 0x164   : > { %694 = dma.vmem_to_hbm [thread:$0]  (%p697_p7), %s506_s28, 128, %s508_s6, [#allocation4]  }
 0x165   : > { %744 = dma.done.wait (%p697_p7), [#allocation4], 128  }
 0x166   : > { %746 = vsyncadd (%p697_p7), [#allocation4], 4294967168 }
 0x167 PF: > { %s16_s18 = sadd.s32 1, %s749_s18  }
 0x168   : > { %p13_p8 = scmp.ge.s32.totalorder %s16_s18, 6  }
 0x16a   :  { %15 = sbr.rel (!%p13_p8) target bundleno = 1 (0x1), region = 78 }
 0x16f   :  { %521 = vsyncpa [#allocation4], 1 }
 0x170   :  { %523 = vsyncpa [#allocation4 + $0x1], 1 }

</bundles_post_ra>
